<compile_context>
chip_gen: v6e
topology: v6e:2x2x1
jax: 0.10.0
libtpu: 0.0.40
codegen_flags: <defaults>
</compile_context>

<pallas_src>
import functools

import jax
import jax.numpy as jnp
from jax.experimental import pallas as pl
from jax.experimental.pallas import tpu as pltpu

LANES = 128  # lane-dense output slab width


def mlp_kernel(x_ref, w1a_ref, b1a_ref, w1b_ref, b1b_ref,
               wfa_ref, bfa_ref, wfb_ref, bfb_ref, out_ref):
    # fc1: Linear -> ReLU -> Dropout(0.5) -> Linear
    # TODO(synk): Dropout(0.5) only affects training; inference is identity.
    # bf16 MXU inputs, f32 accumulation; elementwise math stays f32 (v5e safe).
    h = jnp.dot(x_ref[...], w1a_ref[...], preferred_element_type=jnp.float32)
    h = jnp.maximum(h + b1a_ref[...], 0.0)
    y1 = jnp.dot(h.astype(w1b_ref.dtype), w1b_ref[...],
                 preferred_element_type=jnp.float32) + b1b_ref[...]

    # fc: Linear -> ReLU -> Linear(H, 1)
    h2 = jnp.dot(y1.astype(wfa_ref.dtype), wfa_ref[...],
                 preferred_element_type=jnp.float32)
    h2 = jnp.maximum(h2 + bfa_ref[...], 0.0)

    # Final H->1 layer as a VPU multiply + lane reduction (no 1-column matmul).
    out_col = jnp.sum(h2 * wfb_ref[...], axis=-1, keepdims=True) + bfb_ref[...]

    # Lane-dense store: broadcast the scalar column across all 128 lanes.
    out_ref[...] = jnp.broadcast_to(out_col, out_ref.shape)


def prepare_params(params, input_sizes, f_total):
    """Convert logical [in,out]/(1,out) params into kernel-ready operands."""
    (w1a, b1a, w1b, b1b, wfa, bfa, wfb, bfb) = params
    in0 = input_sizes[0]
    H = w1a.shape[1]
    # Zero-pad fc1's input weight to the full feature width so the kernel can
    # consume the un-sliced x tile (extra feature columns hit zero weights).
    w1a_p = jnp.zeros((f_total, H), jnp.float32).at[:in0, :].set(w1a)
    bf16 = lambda w: w.astype(jnp.bfloat16)
    return (bf16(w1a_p), b1a, bf16(w1b), b1b, bf16(wfa), bfa,
            wfb.T.astype(jnp.float32),   # (1, H) row for the lane reduction
            bfb)                         # (1, 1)


def mlp_forward(x, prepped_params, *, tb=128):
    """x: [B, F_total] float32.  Returns [B, 1] float32."""
    (w1a, b1a, w1b, b1b, wfa, bfa, wfb_row, bfb) = prepped_params
    B, F = x.shape

    n_blocks = pl.cdiv(B, tb)
    b_pad = n_blocks * tb
    if b_pad != B:
        x = jnp.pad(x, ((0, b_pad - B), (0, 0)))
    xb = x.astype(jnp.bfloat16)

    # Weights/biases: full-array blocks, constant index_map -> VMEM-resident.
    const = lambda a: pl.BlockSpec(a.shape, lambda i: (0,) * a.ndim)

    out = pl.pallas_call(
        mlp_kernel,
        out_shape=jax.ShapeDtypeStruct((b_pad, LANES), jnp.float32),
        grid=(n_blocks,),
        in_specs=[
            pl.BlockSpec((tb, F), lambda i: (i, 0)),   # x tile, pipelined
            const(w1a), const(b1a), const(w1b), const(b1b),
            const(wfa), const(bfa), const(wfb_row), const(bfb),
        ],
        out_specs=pl.BlockSpec((tb, LANES), lambda i: (i, 0)),
        compiler_params=pltpu.CompilerParams(
            dimension_semantics=("parallel",),
            vmem_limit_bytes=32 * 1024 * 1024,
        ),
    )(xb, w1a, b1a, w1b, b1b, wfa, bfa, wfb_row, bfb)

    return out[:B, :1]


def init_params(key, input_sizes, hidden):
    """Deterministic synthetic parameters with the same shapes as the PyTorch
    module (nn.Linear weight is [out, in]; we store the [in, out] transpose).
    fc2 / fc3 parameters never influence the output and are not materialized."""
    ks = jax.random.split(key, 4)
    in0 = input_sizes[0]
    H = hidden

    def lin(kw, fan_in, fan_out):
        bound = 1.0 / jnp.sqrt(fan_in)
        w = jax.random.uniform(kw, (fan_in, fan_out), jnp.float32, -bound, bound)
        b = jax.random.uniform(jax.random.fold_in(kw, 1), (1, fan_out),
                               jnp.float32, -bound, bound)
        return w, b

    w1a, b1a = lin(ks[0], in0, H)   # fc1[0]
    w1b, b1b = lin(ks[1], H, H)     # fc1[3]
    wfa, bfa = lin(ks[2], H, H)     # fc[0]
    wfb, bfb = lin(ks[3], H, 1)     # fc[2]
    return (w1a, b1a, w1b, b1b, wfa, bfa, wfb, bfb)


def reference_forward(x, prepped_params):
    """Pure-JAX reference mirroring the kernel's dtype policy exactly."""
    (w1a, b1a, w1b, b1b, wfa, bfa, wfb_row, bfb) = prepped_params
    xb = x.astype(jnp.bfloat16)
    h = jnp.maximum(
        jnp.dot(xb, w1a, preferred_element_type=jnp.float32) + b1a, 0.0)
    y1 = jnp.dot(h.astype(jnp.bfloat16), w1b,
                 preferred_element_type=jnp.float32) + b1b
    h2 = jnp.maximum(
        jnp.dot(y1.astype(jnp.bfloat16), wfa,
                preferred_element_type=jnp.float32) + bfa, 0.0)
    return jnp.sum(h2 * wfb_row, axis=-1, keepdims=True) + bfb


if __name__ == "__main__":
    input_sizes = (16, 12, 20)   # small synthetic feature splits
    hidden = 128                 # lane-aligned hidden size for the demo
    batch = 512
    tb = 128                     # batch tile (multiple of 8; grid of 4 blocks)

    key = jax.random.PRNGKey(0)
    kx, kp = jax.random.split(key)
    x = jax.random.normal(kx, (batch, sum(input_sizes)), jnp.float32)
    params = init_params(kp, input_sizes, hidden)
    prepped = prepare_params(params, input_sizes, sum(input_sizes))

    fwd = jax.jit(functools.partial(mlp_forward, tb=tb))
    out = jax.block_until_ready(fwd(x, prepped))

    ref = reference_forward(x, prepped)
    assert out.shape == (batch, 1)
    assert jnp.allclose(out, ref, atol=1e-3, rtol=1e-3), (
        float(jnp.max(jnp.abs(out - ref))))
    print("KERNEL_OK")
</pallas_src>

<mosaic_0001>
module attributes {stable_mosaic.version = 11 : i64} {
  func.func @mlp_kernel(%arg0: i32, %arg1: memref<128x48xbf16, #tpu.memory_space<vmem>>, %arg2: memref<48x128xbf16, #tpu.memory_space<vmem>>, %arg3: memref<1x128xf32, #tpu.memory_space<vmem>>, %arg4: memref<128x128xbf16, #tpu.memory_space<vmem>>, %arg5: memref<1x128xf32, #tpu.memory_space<vmem>>, %arg6: memref<128x128xbf16, #tpu.memory_space<vmem>>, %arg7: memref<1x128xf32, #tpu.memory_space<vmem>>, %arg8: memref<1x128xf32, #tpu.memory_space<vmem>>, %arg9: memref<1x1xf32, #tpu.memory_space<vmem>>, %arg10: memref<128x128xf32, #tpu.memory_space<vmem>>) attributes {dimension_semantics = [#tpu.dimension_semantics<parallel>], iteration_bounds = array<i64: 4>, scalar_prefetch = 0 : i64, scratch_operands = 0 : i64, tpu.core_type = #tpu.core_type<tc>, window_params = [{transform_indices = @transform_0, window_bounds = array<i64: 128, 48>}, {pipeline_mode = #tpu.pipeline_mode<synchronous>, transform_indices = @transform_1, window_bounds = array<i64: 48, 128>}, {pipeline_mode = #tpu.pipeline_mode<synchronous>, transform_indices = @transform_2, window_bounds = array<i64: 1, 128>}, {pipeline_mode = #tpu.pipeline_mode<synchronous>, transform_indices = @transform_3, window_bounds = array<i64: 128, 128>}, {pipeline_mode = #tpu.pipeline_mode<synchronous>, transform_indices = @transform_4, window_bounds = array<i64: 1, 128>}, {pipeline_mode = #tpu.pipeline_mode<synchronous>, transform_indices = @transform_5, window_bounds = array<i64: 128, 128>}, {pipeline_mode = #tpu.pipeline_mode<synchronous>, transform_indices = @transform_6, window_bounds = array<i64: 1, 128>}, {pipeline_mode = #tpu.pipeline_mode<synchronous>, transform_indices = @transform_7, window_bounds = array<i64: 1, 128>}, {pipeline_mode = #tpu.pipeline_mode<synchronous>, transform_indices = @transform_8, window_bounds = array<i64: 1, 1>}, {transform_indices = @transform_9, window_bounds = array<i64: 128, 128>}]} {
    %c0 = arith.constant 0 : index
    %c0_0 = arith.constant 0 : index
    %0 = vector.load %arg1[%c0, %c0_0] : memref<128x48xbf16, #tpu.memory_space<vmem>>, vector<128x48xbf16>
    %c0_1 = arith.constant 0 : index
    %c0_2 = arith.constant 0 : index
    %1 = vector.load %arg2[%c0_1, %c0_2] : memref<48x128xbf16, #tpu.memory_space<vmem>>, vector<48x128xbf16>
    %cst = arith.constant dense<0.000000e+00> : vector<128x128xf32>
    %2 = tpu.matmul %0, %1, %cst {dimension_numbers = #tpu.dot_dimension_numbers<[1], [0], [0], [1], [0, 0, 1, 1], [], []>} : vector<128x48xbf16>, vector<48x128xbf16>, vector<128x128xf32> -> vector<128x128xf32>
    %c0_3 = arith.constant 0 : index
    %c0_4 = arith.constant 0 : index
    %3 = vector.load %arg3[%c0_3, %c0_4] : memref<1x128xf32, #tpu.memory_space<vmem>>, vector<1x128xf32>
    %4 = vector.broadcast %3 : vector<1x128xf32> to vector<128x128xf32>
    %5 = arith.addf %2, %4 : vector<128x128xf32>
    %cst_5 = arith.constant 0.000000e+00 : f32
    %6 = vector.broadcast %cst_5 : f32 to vector<128x128xf32>
    %7 = arith.maximumf %5, %6 : vector<128x128xf32>
    %8 = arith.truncf %7 : vector<128x128xf32> to vector<128x128xbf16>
    %c0_6 = arith.constant 0 : index
    %c0_7 = arith.constant 0 : index
    %9 = vector.load %arg4[%c0_6, %c0_7] : memref<128x128xbf16, #tpu.memory_space<vmem>>, vector<128x128xbf16>
    %cst_8 = arith.constant dense<0.000000e+00> : vector<128x128xf32>
    %10 = tpu.matmul %8, %9, %cst_8 {dimension_numbers = #tpu.dot_dimension_numbers<[1], [0], [0], [1], [0, 0, 1, 1], [], []>} : vector<128x128xbf16>, vector<128x128xbf16>, vector<128x128xf32> -> vector<128x128xf32>
    %c0_9 = arith.constant 0 : index
    %c0_10 = arith.constant 0 : index
    %11 = vector.load %arg5[%c0_9, %c0_10] : memref<1x128xf32, #tpu.memory_space<vmem>>, vector<1x128xf32>
    %12 = vector.broadcast %11 : vector<1x128xf32> to vector<128x128xf32>
    %13 = arith.addf %10, %12 : vector<128x128xf32>
    %14 = arith.truncf %13 : vector<128x128xf32> to vector<128x128xbf16>
    %c0_11 = arith.constant 0 : index
    %c0_12 = arith.constant 0 : index
    %15 = vector.load %arg6[%c0_11, %c0_12] : memref<128x128xbf16, #tpu.memory_space<vmem>>, vector<128x128xbf16>
    %cst_13 = arith.constant dense<0.000000e+00> : vector<128x128xf32>
    %16 = tpu.matmul %14, %15, %cst_13 {dimension_numbers = #tpu.dot_dimension_numbers<[1], [0], [0], [1], [0, 0, 1, 1], [], []>} : vector<128x128xbf16>, vector<128x128xbf16>, vector<128x128xf32> -> vector<128x128xf32>
    %c0_14 = arith.constant 0 : index
    %c0_15 = arith.constant 0 : index
    %17 = vector.load %arg7[%c0_14, %c0_15] : memref<1x128xf32, #tpu.memory_space<vmem>>, vector<1x128xf32>
    %18 = vector.broadcast %17 : vector<1x128xf32> to vector<128x128xf32>
    %19 = arith.addf %16, %18 : vector<128x128xf32>
    %cst_16 = arith.constant 0.000000e+00 : f32
    %20 = vector.broadcast %cst_16 : f32 to vector<128x128xf32>
    %21 = arith.maximumf %19, %20 : vector<128x128xf32>
    %c0_17 = arith.constant 0 : index
    %c0_18 = arith.constant 0 : index
    %22 = vector.load %arg8[%c0_17, %c0_18] : memref<1x128xf32, #tpu.memory_space<vmem>>, vector<1x128xf32>
    %23 = vector.broadcast %22 : vector<1x128xf32> to vector<128x128xf32>
    %24 = arith.mulf %21, %23 : vector<128x128xf32>
    %cst_19 = arith.constant dense<0.000000e+00> : vector<128xf32>
    %25 = vector.multi_reduction <add>, %24, %cst_19 [1] : vector<128x128xf32> to vector<128xf32>
    %26 = vector.shape_cast %25 : vector<128xf32> to vector<128x1xf32>
    %c0_20 = arith.constant 0 : index
    %c0_21 = arith.constant 0 : index
    %27 = vector.load %arg9[%c0_20, %c0_21] : memref<1x1xf32, #tpu.memory_space<vmem>>, vector<1x1xf32>
    %28 = vector.broadcast %27 : vector<1x1xf32> to vector<128x1xf32>
    %29 = arith.addf %26, %28 : vector<128x1xf32>
    %30 = vector.shape_cast %29 : vector<128x1xf32> to vector<128x1xf32>
    %31 = vector.broadcast %30 : vector<128x1xf32> to vector<128x128xf32>
    %c0_22 = arith.constant 0 : index
    %c0_23 = arith.constant 0 : index
    %32 = vector.load %arg10[%c0_22, %c0_23] : memref<128x128xf32, #tpu.memory_space<vmem>>, vector<128x128xf32>
    tpu.vector_store %arg10[%c0_22, %c0_23], %31 {strides = array<i32>} : memref<128x128xf32, #tpu.memory_space<vmem>>, vector<128x128xf32>,
    return
  }
  func.func @transform_0(%arg0: i32) -> (i32, i32) {
    %c0_i32 = arith.constant 0 : i32
    %c0_i32_0 = arith.constant 0 : i32
    return %arg0, %c0_i32 : i32, i32
  }
  func.func @transform_1(%arg0: i32) -> (i32, i32) {
    %c0_i32 = arith.constant 0 : i32
    %c0_i32_0 = arith.constant 0 : i32
    %c0_i32_1 = arith.constant 0 : i32
    return %c0_i32, %c0_i32_0 : i32, i32
  }
  func.func @transform_2(%arg0: i32) -> (i32, i32) {
    %c0_i32 = arith.constant 0 : i32
    %c0_i32_0 = arith.constant 0 : i32
    %c0_i32_1 = arith.constant 0 : i32
    return %c0_i32, %c0_i32_0 : i32, i32
  }
  func.func @transform_3(%arg0: i32) -> (i32, i32) {
    %c0_i32 = arith.constant 0 : i32
    %c0_i32_0 = arith.constant 0 : i32
    %c0_i32_1 = arith.constant 0 : i32
    return %c0_i32, %c0_i32_0 : i32, i32
  }
  func.func @transform_4(%arg0: i32) -> (i32, i32) {
    %c0_i32 = arith.constant 0 : i32
    %c0_i32_0 = arith.constant 0 : i32
    %c0_i32_1 = arith.constant 0 : i32
    return %c0_i32, %c0_i32_0 : i32, i32
  }
  func.func @transform_5(%arg0: i32) -> (i32, i32) {
    %c0_i32 = arith.constant 0 : i32
    %c0_i32_0 = arith.constant 0 : i32
    %c0_i32_1 = arith.constant 0 : i32
    return %c0_i32, %c0_i32_0 : i32, i32
  }
  func.func @transform_6(%arg0: i32) -> (i32, i32) {
    %c0_i32 = arith.constant 0 : i32
    %c0_i32_0 = arith.constant 0 : i32
    %c0_i32_1 = arith.constant 0 : i32
    return %c0_i32, %c0_i32_0 : i32, i32
  }
  func.func @transform_7(%arg0: i32) -> (i32, i32) {
    %c0_i32 = arith.constant 0 : i32
    %c0_i32_0 = arith.constant 0 : i32
    %c0_i32_1 = arith.constant 0 : i32
    return %c0_i32, %c0_i32_0 : i32, i32
  }
  func.func @transform_8(%arg0: i32) -> (i32, i32) {
    %c0_i32 = arith.constant 0 : i32
    %c0_i32_0 = arith.constant 0 : i32
    %c0_i32_1 = arith.constant 0 : i32
    return %c0_i32, %c0_i32_0 : i32, i32
  }
  func.func @transform_9(%arg0: i32) -> (i32, i32) {
    %c0_i32 = arith.constant 0 : i32
    %c0_i32_0 = arith.constant 0 : i32
    return %arg0, %c0_i32 : i32, i32
  }
}

</mosaic_0001>

<bundles_post_ra>
// kernel: mlp_forward.1
= control target key start
LH: loop header
LB: loop body
LE: loop exit
PB: predicated region body
PF: predicated region fallthrough
CT: control target
= control target key end

     0   :  { %s1442_s11 = smov 0   ;;  %s1604_s0 = inlined_call_operand.vmem [shape: bf16[512,48], index: 0, kind: input, shape index: {}]   ;;  %s1605_s1 = inlined_call_operand.vmem [shape: bf16[48,128], index: 1, kind: input, shape index: {}]   ;;  %s1606_s2 = inlined_call_operand.vmem [shape: f32[1,128], index: 2, kind: input, shape index: {}]   ;;  %s1607_s3 = inlined_call_operand.vmem [shape: bf16[128,128], index: 3, kind: input, shape index: {}]   ;;  %s1608_s4 = inlined_call_operand.vmem [shape: f32[1,128], index: 4, kind: input, shape index: {}]   ;;  %s1609_s5 = inlined_call_operand.vmem [shape: bf16[128,128], index: 5, kind: input, shape index: {}]   ;;  %s1610_s6 = inlined_call_operand.vmem [shape: f32[1,128], index: 6, kind: input, shape index: {}]   ;;  %s1611_s7 = inlined_call_operand.vmem [shape: f32[1,128], index: 7, kind: input, shape index: {}]   ;;  %s1612_s8 = inlined_call_operand.<no memory space> [shape: f32[1,1], index: 8, kind: input, shape index: {}]   ;;  %s1613_s9 = inlined_call_operand.vmem [shape: f32[512,128], index: 9, kind: output, shape index: {}]  }
   0x1   :  { %v14_v0 = vstv %s1612_s8 }
   0x2   :  { %15 = vst [vmem:[#allocation2] sm:$0x1] %v14_v0 }
   0x3 LB: > { %s1162_s12 = sadd.s32 4294967295, %s1386_s11   ;;  %p1166_p0 = scmp.ge.s32.totalorder %s1386_s11, 1  ;;  %s1386_s11 = sphi %s1442_s11, %s21_s11  }
   0x4   : > { %p290_p1 = scmp.lt.s32.totalorder %s1386_s11, 5 }
   0x6   : > { %p291_p2 = pnand %p1166_p0, %p290_p1 }
   0x7   : > { %s1167_s8 = sshll.u32 (!%p291_p2), %s1162_s12, 4 }
   0x8   : > { %294 = sbr.rel (%p291_p2) target bundleno = 940 (0x3ac), region = 56  ;;  %p327_p3 = scmp.lt.s32.totalorder (!%p291_p2), %s1167_s8, 63 }
   0xd   : > { %v1353_v1 = vld [vmem:[%s1605_s1 + $0x10] sm:$0xff]   ;;  %v1354_v2 = vld [vmem:[%s1605_s1 + $0x8] sm:$0xff]   ;;  %v1355_v3 = vld [vmem:[%s1605_s1] sm:$0xff]   ;;  %s1615_s8 = smov (!%p327_p3, %s1167_s8), 63  ;;  %vm426_vm0 = vcmask 392192  }
   0xe   : > { %1256 = vmatprep.subr.bf16.mxu0 %v1353_v1  ;;  %v1364_v4 = vld [vmem:[%s1607_s3 + $0x38] sm:$0xff]   ;;  %v1365_v5 = vld [vmem:[%s1607_s3 + $0x30] sm:$0xff]   ;;  %s1168_s23 = sshll.u32 %s1615_s8, 2  ;;  %v1366_v6 = vld [vmem:[%s1607_s3 + $0x28] sm:$0xff]  }
   0xf   : > { %1257 = vmatpush3.bf16.msra.mxu0 %v1353_v1  ;;  %1278 = vmatprep.subr.bf16.mxu1 %v1364_v4  ;;  %s1471_s26 = scalar_lea.vmem %s1604_s0, %s1168_s23  ;;  %v1367_v8 = vld [vmem:[%s1607_s3 + $0x20] sm:$0xff]   ;;  %v1368_v11 = vld [vmem:[%s1607_s3 + $0x18] sm:$0xff]   ;;  %v1369_v17 = vld [vmem:[%s1607_s3 + $0x10] sm:$0xff]   ;;  %s1170_s23 = sshll.u32 %s1615_s8, 3 }
  0x10   : > { %1258 = vmatprep.subr.bf16.mxu0 %v1354_v2  ;;  %1279 = vmatpush3.bf16.msra.mxu1 %v1364_v4  ;;  %v1356_v7 = vld [vmem:[%s1471_s26] sm:$0xff]   ;;  %v1357_v9 = vld [vmem:[%s1471_s26 + $0x8] sm:$0xff]   ;;  %v1358_v10 = vld [vmem:[%s1471_s26 + $0x10] sm:$0xff]  }
  0x11   : > { %1280 = vmatprep.subr.bf16.mxu1 %v1365_v5  ;;  %1262 = vmatprep.mubr.msk.bf16.mxu0 %vm426_vm0, %v1356_v7  ;;  %v1359_v12 = vld [vmem:[%s1471_s26 + $0x18] sm:$0xff]   ;;  %v1360_v13 = vld [vmem:[%s1471_s26 + $0x20] sm:$0xff]   ;;  %v1361_v14 = vld [vmem:[%s1471_s26 + $0x28] sm:$0xff]  }
  0x12   : > { %v1362_v15 = vld [vmem:[%s1471_s26 + $0x30] sm:$0xff]   ;;  %v1363_v16 = vld [vmem:[%s1471_s26 + $0x38] sm:$0xff]   ;;  %v1370_v18 = vld [vmem:[%s1607_s3 + $0x8] sm:$0xff]   ;;  %s1583_s26 = scalar_lea.vmem %s1613_s9, %s1170_s23 }
  0x13   : > { %1259 = vmatpush3.bf16.msra.mxu0 %v1354_v2  ;;  %v1371_v19 = vld [vmem:[%s1607_s3] sm:$0xff]   ;;  %v1372_v20 = vld [vmem:[%s1609_s5 + $0x38] sm:$0xff]   ;;  %v1373_v21 = vld [vmem:[%s1609_s5 + $0x30] sm:$0xff]  }
  0x14   : > { %1260 = vmatprep.subr.bf16.mxu0 %v1355_v3  ;;  %1281 = vmatpush3.bf16.msra.mxu1 %v1365_v5  ;;  %v1374_v22 = vld [vmem:[%s1609_s5 + $0x28] sm:$0xff]   ;;  %v1375_v23 = vld [vmem:[%s1609_s5 + $0x20] sm:$0xff]   ;;  %v1376_v24 = vld [vmem:[%s1609_s5 + $0x18] sm:$0xff]  }
  0x15   : > { %1282 = vmatprep.subr.bf16.mxu1 %v1366_v6  ;;  %v1377_v25 = vld [vmem:[%s1609_s5 + $0x10] sm:$0xff]   ;;  %v1171_v28 = vld [vmem:[%s1606_s2] ss:$0 sm:$0xff] }
  0x17   : > { %1261 = vmatpush3.bf16.msra.mxu0 %v1355_v3 }
  0x18   : > { %1283 = vmatpush3.bf16.msra.mxu1 %v1366_v6  ;;  %1310 = vmatprep.subr.bf16.mxu0 %v1372_v20 }
  0x19   : > { %1284 = vmatprep.subr.bf16.mxu1 %v1367_v8 }
  0x1a   : > { %1263 = vmatmul.mubr.msk.bf16.vlgmr.msra.gmra.mxu0 %vm426_vm0, %v1357_v9 }
  0x1b   : > { %1266 = vmatprep.mubr.msk.bf16.mxu0 %vm426_vm0, %v1358_v10  ;;  %1311 = vmatpush3.bf16.msra.mxu0 %v1372_v20  ;;  %v1379_v20 = vld [vmem:[%s1609_s5] sm:$0xff]  }
  0x1c   : > { %1285 = vmatpush3.bf16.msra.mxu1 %v1367_v8  ;;  %1312 = vmatprep.subr.bf16.mxu0 %v1373_v21 }
  0x1d   : > { %1286 = vmatprep.subr.bf16.mxu1 %v1368_v11 }
  0x1f   : > { %1313 = vmatpush3.bf16.msra.mxu0 %v1373_v21 }
  0x20   : > { %1287 = vmatpush3.bf16.msra.mxu1 %v1368_v11  ;;  %1314 = vmatprep.subr.bf16.mxu0 %v1374_v22 }
  0x21   : > { %1288 = vmatprep.subr.bf16.mxu1 %v1369_v17 }
  0x22   : > { %1267 = vmatmul.mubr.msk.bf16.gmra.mxu0 %vm426_vm0, %v1359_v12 }
  0x23   : > { %1270 = vmatprep.mubr.msk.bf16.mxu0 %vm426_vm0, %v1360_v13  ;;  %1315 = vmatpush3.bf16.msra.mxu0 %v1374_v22 }
  0x24   : > { %1289 = vmatpush3.bf16.msra.mxu1 %v1369_v17  ;;  %1316 = vmatprep.subr.bf16.mxu0 %v1375_v23 }
  0x25   : > { %1290 = vmatprep.subr.bf16.mxu1 %v1370_v18 }
  0x27   : > { %1317 = vmatpush3.bf16.msra.mxu0 %v1375_v23 }
  0x28   : > { %1291 = vmatpush3.bf16.msra.mxu1 %v1370_v18  ;;  %1318 = vmatprep.subr.bf16.mxu0 %v1376_v24 }
  0x29   : > { %1292 = vmatprep.subr.bf16.mxu1 %v1371_v19 }
  0x2a   : > { %1271 = vmatmul.mubr.msk.bf16.gmra.mxu0 %vm426_vm0, %v1361_v14 }
  0x2b   : > { %1274 = vmatprep.mubr.msk.bf16.mxu0 %vm426_vm0, %v1362_v15  ;;  %1319 = vmatpush3.bf16.msra.mxu0 %v1376_v24  ;;  %v1191_v24 = vld [vmem:[%s1608_s4] ss:$0 sm:$0xff] }
  0x2c   : > { %1293 = vmatpush3.bf16.msra.mxu1 %v1371_v19  ;;  %1320 = vmatprep.subr.bf16.mxu0 %v1377_v25  ;;  %v1378_v19 = vld [vmem:[%s1609_s5 + $0x8] sm:$0xff]  }
  0x2f   : > { %1321 = vmatpush3.bf16.msra.mxu0 %v1377_v25 }
  0x30   : > { %1322 = vmatprep.subr.bf16.mxu0 %v1378_v19 }
  0x32   : > { %1275 = vmatmul.mubr.msk.bf16.gmra.mxu0 %vm426_vm0, %v1363_v16 }
  0x33   : > { %1323 = vmatpush3.bf16.msra.mxu0 %v1378_v19 }
  0x34   : > { %1324 = vmatprep.subr.bf16.mxu0 %v1379_v20 }
  0x37   : > { %1325 = vmatpush3.bf16.msra.mxu0 %v1379_v20 }
  0xda   : > { %v1264_v26 = vpop.f32.mrf.mxu0 }
  0xdb   : > { %v494_v32 = vadd.f32 %v1264_v26, %v1171_v28 }
  0xdc   : > { %v485_v27 = vpop.f32.mrf.mxu0 }
  0xdd   : > { %v486_v30 = vadd.f32 %v1171_v28, %v485_v27  ;;  %v550_v39 = vmax.f32 %v494_v32, 0.0 }
  0xde   : > { %v1265_v29 = vpop.f32.mrf.mxu0 }
  0xdf   : > { %v497_v31 = vadd.f32 %v1265_v29, %v1171_v28  ;;  %v548_v37 = vmax.f32 %v486_v30, 0.0 }
  0xe0   : > { %v488_v33 = vpop.f32.mrf.mxu0 }
  0xe1   : > { %v489_v34 = vadd.f32 %v1171_v28, %v488_v33  ;;  %v551_v35 = vmax.f32 %v497_v31, 0.0 }
  0xe2   : > { %v1268_v36 = vpop.f32.mrf.mxu0 }
  0xe3   : > { %v549_v38 = vmax.f32 %v489_v34, 0.0  ;;  %v565_v42 = vpack.c.bf16 %v551_v35, %v550_v39  ;;  %v510_v43 = vadd.f32 %v1268_v36, %v1171_v28 }
  0xe4   : > { %v501_v40 = vpop.f32.mrf.mxu0 }
  0xe5   : > { %v564_v41 = vpack.c.bf16 %v549_v38, %v548_v37  ;;  %v502_v45 = vadd.f32 %v1171_v28, %v501_v40  ;;  %v554_v49 = vmax.f32 %v510_v43, 0.0 }
  0xe6   : > { %v1269_v44 = vpop.f32.mrf.mxu0 }
  0xe7   : > { %v513_v46 = vadd.f32 %v1269_v44, %v1171_v28  ;;  %1294 = vmatprep.mubr.bf16.mxu1 %v564_v41  ;;  %v552_v52 = vmax.f32 %v502_v45, 0.0 }
  0xe8   : > { %v504_v47 = vpop.f32.mrf.mxu0  ;;  %1295 = vmatmul.mubr.bf16.vlgmr.msra.gmra.mxu1 %v565_v42 }
  0xe9   : > { %v505_v48 = vadd.f32 %v1171_v28, %v504_v47  ;;  %v555_v50 = vmax.f32 %v513_v46, 0.0 }
  0xea   : > { %v1272_v51 = vpop.f32.mrf.mxu0 }
  0xeb   : > { %v553_v53 = vmax.f32 %v505_v48, 0.0  ;;  %v567_v56 = vpack.c.bf16 %v555_v50, %v554_v49  ;;  %v526_v57 = vadd.f32 %v1272_v51, %v1171_v28 }
  0xec   : > { %v517_v54 = vpop.f32.mrf.mxu0 }
  0xed   : > { %v566_v55 = vpack.c.bf16 %v553_v53, %v552_v52  ;;  %v518_v59 = vadd.f32 %v1171_v28, %v517_v54  ;;  %v558_v63 = vmax.f32 %v526_v57, 0.0 }
  0xee   : > { %v1273_v58 = vpop.f32.mrf.mxu0 }
  0xef   : > { %v529_v60 = vadd.f32 %v1273_v58, %v1171_v28  ;;  %1298 = vmatprep.mubr.bf16.mxu1 %v566_v55  ;;  %v556_v2 = vmax.f32 %v518_v59, 0.0 }
  0xf0   : > { %v520_v61 = vpop.f32.mrf.mxu0  ;;  %1299 = vmatmul.mubr.bf16.gmra.mxu1 %v567_v56 }
  0xf1   : > { %v521_v62 = vadd.f32 %v1171_v28, %v520_v61  ;;  %v559_v0 = vmax.f32 %v529_v60, 0.0 }
  0xf2   : > { %v1276_v1 = vpop.f32.mrf.mxu0 }
  0xf3   : > { %v557_v3 = vmax.f32 %v521_v62, 0.0  ;;  %v569_v6 = vpack.c.bf16 %v559_v0, %v558_v63  ;;  %v542_v7 = vadd.f32 %v1276_v1, %v1171_v28  ;;  %v1540_v62 = vld [vmem:[%s1610_s6] ss:$0 sm:$0xff] }
  0xf4   : > { %v533_v4 = vpop.f32.mrf.mxu0 }
  0xf5   : > { %v568_v5 = vpack.c.bf16 %v557_v3, %v556_v2  ;;  %v534_v9 = vadd.f32 %v1171_v28, %v533_v4  ;;  %v562_v13 = vmax.f32 %v542_v7, 0.0  ;;  %v1546_v2 = vld [vmem:[%s1611_s7] ss:$0 sm:$0xff] }
  0xf6   : > { %v1277_v8 = vpop.f32.mrf.mxu0 }
  0xf7   : > { %v545_v10 = vadd.f32 %v1277_v8, %v1171_v28  ;;  %1302 = vmatprep.mubr.bf16.mxu1 %v568_v5  ;;  %v560_v15 = vmax.f32 %v534_v9, 0.0 }
  0xf8   : > { %v536_v11 = vpop.f32.mrf.mxu0  ;;  %1303 = vmatmul.mubr.bf16.gmra.mxu1 %v569_v6 }
  0xf9   : > { %v537_v12 = vadd.f32 %v1171_v28, %v536_v11  ;;  %v563_v14 = vmax.f32 %v545_v10, 0.0 }
  0xfb   : > { %v561_v16 = vmax.f32 %v537_v12, 0.0  ;;  %v571_v18 = vpack.c.bf16 %v563_v14, %v562_v13 }
  0xfd   : > { %v570_v17 = vpack.c.bf16 %v561_v16, %v560_v15 }
  0xff   : > { %1306 = vmatprep.mubr.bf16.mxu1 %v570_v17 }
 0x100   : > { %1307 = vmatmul.mubr.bf16.gmra.mxu1 %v571_v18 }
 0x1a8   : > { %v1296_v21 = vpop.f32.mrf.mxu1 }
 0x1a9   : > { %v686_v29 = vadd.f32 %v1296_v21, %v1191_v24 }
 0x1aa   : > { %v677_v22 = vpop.f32.mrf.mxu1 }
 0x1ab   : > { %v678_v27 = vadd.f32 %v1191_v24, %v677_v22 }
 0x1ac   : > { %v1297_v23 = vpop.f32.mrf.mxu1 }
 0x1ad   : > { %v689_v25 = vadd.f32 %v1297_v23, %v1191_v24 }
 0x1ae   : > { %v680_v26 = vpop.f32.mrf.mxu1 }
 0x1af   : > { %v681_v28 = vadd.f32 %v1191_v24, %v680_v26  ;;  %v741_v32 = vpack.c.bf16 %v689_v25, %v686_v29 }
 0x1b0   : > { %v1300_v30 = vpop.f32.mrf.mxu1 }
 0x1b1   : > { %v740_v31 = vpack.c.bf16 %v681_v28, %v678_v27  ;;  %v702_v39 = vadd.f32 %v1300_v30, %v1191_v24 }
 0x1b2   : > { %v693_v33 = vpop.f32.mrf.mxu1 }
 0x1b3   : > { %1326 = vmatprep.mubr.bf16.mxu0 %v740_v31  ;;  %v694_v37 = vadd.f32 %v1191_v24, %v693_v33  ;;  %v1388_v33 = vmov 0  }
 0x1b4   : > { %v1301_v34 = vpop.f32.mrf.mxu1  ;;  %1327 = vmatmul.mubr.bf16.vlgmr.msra.gmra.mxu0 %v741_v32  ;;  %1351 = vset.pattern.permute.xlu1 %v1388_v33 }
 0x1b5   : > { %v705_v35 = vadd.f32 %v1301_v34, %v1191_v24  ;;  %1352 = vset.pattern.permute.xlu0 %v1388_v33 }
 0x1b6   : > { %v696_v36 = vpop.f32.mrf.mxu1 }
 0x1b7   : > { %v697_v38 = vadd.f32 %v1191_v24, %v696_v36  ;;  %v743_v42 = vpack.c.bf16 %v705_v35, %v702_v39 }
 0x1b8   : > { %v1304_v40 = vpop.f32.mrf.mxu1 }
 0x1b9   : > { %v742_v41 = vpack.c.bf16 %v697_v38, %v694_v37  ;;  %v718_v49 = vadd.f32 %v1304_v40, %v1191_v24 }
 0x1ba   : > { %v709_v43 = vpop.f32.mrf.mxu1 }
 0x1bb   : > { %1330 = vmatprep.mubr.bf16.mxu0 %v742_v41  ;;  %v710_v47 = vadd.f32 %v1191_v24, %v709_v43 }
 0x1bc   : > { %v1305_v44 = vpop.f32.mrf.mxu1  ;;  %1331 = vmatmul.mubr.bf16.gmra.mxu0 %v743_v42 }
 0x1bd   : > { %v721_v45 = vadd.f32 %v1305_v44, %v1191_v24 }
 0x1be   : > { %v712_v46 = vpop.f32.mrf.mxu1 }
 0x1bf   : > { %v713_v48 = vadd.f32 %v1191_v24, %v712_v46  ;;  %v745_v52 = vpack.c.bf16 %v721_v45, %v718_v49 }
 0x1c0   : > { %v1308_v50 = vpop.f32.mrf.mxu1 }
 0x1c1   : > { %v744_v51 = vpack.c.bf16 %v713_v48, %v710_v47  ;;  %v734_v59 = vadd.f32 %v1308_v50, %v1191_v24 }
 0x1c2   : > { %v725_v53 = vpop.f32.mrf.mxu1 }
 0x1c3   : > { %1334 = vmatprep.mubr.bf16.mxu0 %v744_v51  ;;  %v726_v57 = vadd.f32 %v1191_v24, %v725_v53 }
 0x1c4   : > { %v1309_v54 = vpop.f32.mrf.mxu1  ;;  %1335 = vmatmul.mubr.bf16.gmra.mxu0 %v745_v52 }
 0x1c5   : > { %v737_v55 = vadd.f32 %v1309_v54, %v1191_v24 }
 0x1c6   : > { %v728_v56 = vpop.f32.mrf.mxu1 }
 0x1c7   : > { %v729_v58 = vadd.f32 %v1191_v24, %v728_v56  ;;  %v747_v61 = vpack.c.bf16 %v737_v55, %v734_v59 }
 0x1c9   : > { %v746_v60 = vpack.c.bf16 %v729_v58, %v726_v57 }
 0x1cb   : > { %1338 = vmatprep.mubr.bf16.mxu0 %v746_v60 }
 0x1cc   : > { %1339 = vmatmul.mubr.bf16.gmra.mxu0 %v747_v61 }
 0x274   : > { %v1328_v63 = vpop.f32.mrf.mxu0 }
 0x275   : > { %v862_v0 = vadd.f32 %v1328_v63, %v1540_v62 }
 0x276   : > { %v853_v1 = vpop.f32.mrf.mxu0 }
 0x277   : > { %v918_v3 = vmax.f32 %v862_v0, 0.0  ;;  %v854_v4 = vadd.f32 %v1540_v62, %v853_v1 }
 0x278   : > { %v1329_v5 = vpop.f32.mrf.mxu0 }
 0x279   : > { %v916_v6 = vmax.f32 %v854_v4, 0.0  ;;  %v865_v7 = vadd.f32 %v1329_v5, %v1540_v62  ;;  %v941_v8 = vmul.f32 %v1546_v2, %v918_v3  ;;  %v1210_v3 = vld [vmem:[#allocation2] ss:$0 sm:$0xff] }
 0x27a   : > { %v856_v9 = vpop.f32.mrf.mxu0 }
 0x27b   : > { %v919_v10 = vmax.f32 %v865_v7, 0.0  ;;  %v857_v11 = vadd.f32 %v1540_v62, %v856_v9  ;;  %959 = vadd.xlane.f32.xlu1 %v941_v8  ;;  %v939_v12 = vmul.f32 %v1546_v2, %v916_v6 }
 0x27c   : > { %v1332_v13 = vpop.f32.mrf.mxu0 }
 0x27d   : > { %v917_v14 = vmax.f32 %v857_v11, 0.0  ;;  %v878_v15 = vadd.f32 %v1332_v13, %v1540_v62  ;;  %955 = vadd.xlane.f32.xlu0 %v939_v12  ;;  %v942_v16 = vmul.f32 %v1546_v2, %v919_v10 }
 0x27e   : > { %v869_v17 = vpop.f32.mrf.mxu0 }
 0x27f   : > { %v922_v18 = vmax.f32 %v878_v15, 0.0  ;;  %v870_v19 = vadd.f32 %v1540_v62, %v869_v17  ;;  %961 = vadd.xlane.f32.xlu1 %v942_v16  ;;  %v940_v20 = vmul.f32 %v1546_v2, %v917_v14 }
 0x280   : > { %v1333_v21 = vpop.f32.mrf.mxu0 }
 0x281   : > { %v881_v22 = vadd.f32 %v1333_v21, %v1540_v62  ;;  %957 = vadd.xlane.f32.xlu0 %v940_v20  ;;  %v920_v24 = vmax.f32 %v870_v19, 0.0  ;;  %v945_v27 = vmul.f32 %v1546_v2, %v922_v18 }
 0x282   : > { %v872_v23 = vpop.f32.mrf.mxu0 }
 0x283   : > { %v923_v25 = vmax.f32 %v881_v22, 0.0  ;;  %v873_v26 = vadd.f32 %v1540_v62, %v872_v23  ;;  %v943_v36 = vmul.f32 %v1546_v2, %v920_v24 }
 0x284   : > { %v1336_v28 = vpop.f32.mrf.mxu0 }
 0x285   : > { %v921_v29 = vmax.f32 %v873_v26, 0.0  ;;  %v894_v30 = vadd.f32 %v1336_v28, %v1540_v62  ;;  %967 = vadd.xlane.f32.xlu0 %v945_v27  ;;  %v946_v31 = vmul.f32 %v1546_v2, %v923_v25 }
 0x286   : > { %v885_v32 = vpop.f32.mrf.mxu0 }
 0x287   : > { %v926_v34 = vmax.f32 %v894_v30, 0.0  ;;  %v886_v35 = vadd.f32 %v1540_v62, %v885_v32  ;;  %969 = vadd.xlane.f32.xlu1 %v946_v31  ;;  %v944_v39 = vmul.f32 %v1546_v2, %v921_v29 }
 0x288   : > { %v1337_v37 = vpop.f32.mrf.mxu0 }
 0x289   : > { %v897_v38 = vadd.f32 %v1337_v37, %v1540_v62  ;;  %963 = vadd.xlane.f32.xlu0 %v943_v36  ;;  %v924_v41 = vmax.f32 %v886_v35, 0.0  ;;  %v949_v44 = vmul.f32 %v1546_v2, %v926_v34 }
 0x28a   : > { %v888_v40 = vpop.f32.mrf.mxu0 }
 0x28b   : > { %v927_v42 = vmax.f32 %v897_v38, 0.0  ;;  %v889_v43 = vadd.f32 %v1540_v62, %v888_v40  ;;  %965 = vadd.xlane.f32.xlu1 %v944_v39  ;;  %v947_v51 = vmul.f32 %v1546_v2, %v924_v41 }
 0x28c   : > { %v1340_v45 = vpop.f32.mrf.mxu0 }
 0x28d   : > { %v925_v46 = vmax.f32 %v889_v43, 0.0  ;;  %975 = vadd.xlane.f32.xlu0 %v949_v44  ;;  %v950_v47 = vmul.f32 %v1546_v2, %v927_v42  ;;  %v910_v49 = vadd.f32 %v1340_v45, %v1540_v62 }
 0x28e   : > { %v901_v48 = vpop.f32.mrf.mxu0 }
 0x28f   : > { %v902_v50 = vadd.f32 %v1540_v62, %v901_v48  ;;  %977 = vadd.xlane.f32.xlu1 %v950_v47  ;;  %v948_v55 = vmul.f32 %v1546_v2, %v925_v46  ;;  %v930_v57 = vmax.f32 %v910_v49, 0.0 }
 0x290   : > { %v1341_v52 = vpop.f32.mrf.mxu0 }
 0x291   : > { %v928_v53 = vmax.f32 %v902_v50, 0.0  ;;  %v913_v54 = vadd.f32 %v1341_v52, %v1540_v62  ;;  %971 = vadd.xlane.f32.xlu0 %v947_v51  ;;  %v953_v0 = vmul.f32 %v1546_v2, %v930_v57 }
 0x292   : > { %v904_v56 = vpop.f32.mrf.mxu0 }
 0x293   : > { %v931_v58 = vmax.f32 %v913_v54, 0.0  ;;  %v905_v59 = vadd.f32 %v1540_v62, %v904_v56  ;;  %973 = vadd.xlane.f32.xlu1 %v948_v55  ;;  %v951_v60 = vmul.f32 %v1546_v2, %v928_v53 }
 0x295   : > { %v929_v61 = vmax.f32 %v905_v59, 0.0  ;;  %979 = vadd.xlane.f32.xlu0 %v951_v60  ;;  %v954_v63 = vmul.f32 %v1546_v2, %v931_v58 }
 0x297   : > { %985 = vadd.xlane.f32.xlu1 %v954_v63  ;;  %v952_v1 = vmul.f32 %v1546_v2, %v929_v61 }
 0x299   : > { %983 = vadd.xlane.f32.xlu0 %v953_v0 }
 0x29b   : > { %981 = vadd.xlane.f32.xlu1 %v952_v1 }
 0x304   : > { %v960_v4 = vpop.xlane.xlu1 %959 }
 0x305   : > { %v996_v5 = vadd.f32 %v1210_v3, %v960_v4 }
 0x306   : > { %v956_v6 = vpop.xlane.xlu0 %955 }
 0x307   : > { %v994_v7 = vadd.f32 %v1210_v3, %v956_v6  ;;  %1022 = vperm.xlu1 %1351, %v996_v5  }
 0x308   : > { %v962_v62 = vpop.xlane.xlu1 %961 }
 0x309   : > { %v997_v8 = vadd.f32 %v1210_v3, %v962_v62  ;;  %1012 = vperm.xlu0 %1352, %v994_v7  }
 0x30a   : > { %v958_v9 = vpop.xlane.xlu0 %957 }
 0x30b   : > { %1027 = vperm.xlu1 %1351, %v997_v8   ;;  %v995_v10 = vadd.f32 %v1210_v3, %v958_v9 }
 0x30e   : > { %v968_v11 = vpop.xlane.xlu0 %967 }
 0x30f   : > { %1017 = vperm.xlu1 %1351, %v995_v10   ;;  %v1000_v13 = vadd.f32 %v1210_v3, %v968_v11 }
 0x310   : > { %v970_v12 = vpop.xlane.xlu1 %969 }
 0x311   : > { %v1001_v18 = vadd.f32 %v1210_v3, %v970_v12 }
 0x312   : > { %v964_v14 = vpop.xlane.xlu0 %963 }
 0x313   : > { %1042 = vperm.xlu1 %1351, %v1000_v13   ;;  %v998_v15 = vadd.f32 %v1210_v3, %v964_v14 }
 0x314   : > { %v966_v2 = vpop.xlane.xlu1 %965 }
 0x315   : > { %v999_v21 = vadd.f32 %v1210_v3, %v966_v2 }
 0x316   : > { %v976_v16 = vpop.xlane.xlu0 %975 }
 0x317   : > { %1032 = vperm.xlu1 %1351, %v998_v15   ;;  %v1004_v25 = vadd.f32 %v1210_v3, %v976_v16 }
 0x318   : > { %v978_v17 = vpop.xlane.xlu1 %977 }
 0x319   : > { %v1005_v19 = vadd.f32 %v1210_v3, %v978_v17 }
 0x31a   : > { %v972_v23 = vpop.xlane.xlu0 %971 }
 0x31b   : > { %1067 = vperm.xlu0 %1352, %v1005_v19   ;;  %1047 = vperm.xlu1 %1351, %v1001_v18   ;;  %v1002_v28 = vadd.f32 %v1210_v3, %v972_v23 }
 0x31c   : > { %v974_v20 = vpop.xlane.xlu1 %973 }
 0x31d   : > { %v1003_v22 = vadd.f32 %v1210_v3, %v974_v20 }
 0x31e   : > { %v980_v26 = vpop.xlane.xlu0 %979 }
 0x31f   : > { %1057 = vperm.xlu0 %1352, %v1003_v22   ;;  %1037 = vperm.xlu1 %1351, %v999_v21   ;;  %v1006_v30 = vadd.f32 %v1210_v3, %v980_v26 }
 0x320   : > { %v986_v24 = vpop.xlane.xlu1 %985 }
 0x321   : > { %v1009_v31 = vadd.f32 %v1210_v3, %v986_v24 }
 0x322   : > { %v984_v32 = vpop.xlane.xlu0 %983 }
 0x323   : > { %1062 = vperm.xlu1 %1351, %v1004_v25   ;;  %v1008_v33 = vadd.f32 %v1210_v3, %v984_v32 }
 0x324   : > { %v982_v27 = vpop.xlane.xlu1 %981 }
 0x325   : > { %v1007_v29 = vadd.f32 %v1210_v3, %v982_v27 }
 0x327   : > { %1077 = vperm.xlu0 %1352, %v1007_v29   ;;  %1052 = vperm.xlu1 %1351, %v1002_v28  }
 0x32b   : > { %1087 = vperm.xlu0 %1352, %v1009_v31   ;;  %1072 = vperm.xlu1 %1351, %v1006_v30  }
 0x32f   : > { %1082 = vperm.xlu1 %1351, %v1008_v33  }
 0x382   : > { %v1023_v34 = vpop.permute.xlu1 %1022 }
 0x383   : > { %1092 = vst [vmem:[%s1583_s26 + $0x10] sm:$0xff] %v1023_v34 }
 0x384   : > { %v1013_v35 = vpop.permute.xlu0 %1012 }
 0x385   : > { %1090 = vst [vmem:[%s1583_s26] sm:$0xff] %v1013_v35 }
 0x386   : > { %v1028_v36 = vpop.permute.xlu1 %1027 }
 0x387   : > { %1093 = vst [vmem:[%s1583_s26 + $0x18] sm:$0xff] %v1028_v36 }
 0x38a   : > { %v1018_v37 = vpop.permute.xlu1 %1017 }
 0x38b   : > { %1091 = vst [vmem:[%s1583_s26 + $0x8] sm:$0xff] %v1018_v37 }
 0x38e   : > { %v1043_v38 = vpop.permute.xlu1 %1042 }
 0x38f   : > { %1096 = vst [vmem:[%s1583_s26 + $0x30] sm:$0xff] %v1043_v38 }
 0x392   : > { %v1033_v39 = vpop.permute.xlu1 %1032 }
 0x393   : > { %1094 = vst [vmem:[%s1583_s26 + $0x20] sm:$0xff] %v1033_v39 }
 0x396   : > { %v1048_v40 = vpop.permute.xlu1 %1047  ;;  %v1068_v41 = vpop.permute.xlu0 %1067 }
 0x397   : > { %1097 = vst [vmem:[%s1583_s26 + $0x38] sm:$0xff] %v1048_v40  ;;  %1101 = vst [vmem:[%s1583_s26 + $0x58] sm:$0xff] %v1068_v41 }
 0x39a   : > { %v1038_v42 = vpop.permute.xlu1 %1037  ;;  %v1058_v43 = vpop.permute.xlu0 %1057 }
 0x39b   : > { %1095 = vst [vmem:[%s1583_s26 + $0x28] sm:$0xff] %v1038_v42  ;;  %1099 = vst [vmem:[%s1583_s26 + $0x48] sm:$0xff] %v1058_v43 }
 0x39e   : > { %v1063_v44 = vpop.permute.xlu1 %1062 }
 0x39f   : > { %1100 = vst [vmem:[%s1583_s26 + $0x50] sm:$0xff] %v1063_v44 }
 0x3a2   : > { %v1053_v45 = vpop.permute.xlu1 %1052  ;;  %v1078_v46 = vpop.permute.xlu0 %1077 }
 0x3a3   : > { %1098 = vst [vmem:[%s1583_s26 + $0x40] sm:$0xff] %v1053_v45  ;;  %1103 = vst [vmem:[%s1583_s26 + $0x68] sm:$0xff] %v1078_v46 }
 0x3a6   : > { %v1073_v47 = vpop.permute.xlu1 %1072  ;;  %v1088_v48 = vpop.permute.xlu0 %1087 }
 0x3a7   : > { %1102 = vst [vmem:[%s1583_s26 + $0x60] sm:$0xff] %v1073_v47  ;;  %1105 = vst [vmem:[%s1583_s26 + $0x78] sm:$0xff] %v1088_v48 }
 0x3aa   : > { %v1083_v49 = vpop.permute.xlu1 %1082 }
 0x3ab   : > { %1104 = vst [vmem:[%s1583_s26 + $0x70] sm:$0xff] %v1083_v49 }
 0x3ac PF: > { %s21_s11 = sadd.s32 1, %s1386_s11  }
 0x3ad   : > { %p18_p4 = scmp.ge.s32.totalorder %s21_s11, 6  }
 0x3af   :  { %20 = sbr.rel (!%p18_p4) target bundleno = 3 (0x3), region = 86 }

</bundles_post_ra>
